<compile_context>
chip_gen: v5e
topology: v5e:2x2
jax: 0.10.0
libtpu: 0.0.40
codegen_flags: <defaults>
</compile_context>

<pallas_src>
import math

import jax
import jax.numpy as jnp
from jax.experimental import pallas as pl
from jax.experimental.pallas import tpu as pltpu


def _round_up(x, m):
    return ((x + m - 1) // m) * m


def _vmem_cap_bytes():
    # Physical VMEM per core (v5e/v6e: 128 MiB, v7x: 64 MiB); conservative
    # fallback if the query is unavailable.
    try:
        return int(getattr(pltpu.get_tpu_info(), "vmem_capacity_bytes", 64 << 20))
    except Exception:
        return 64 << 20


def _compiler_params(sems, vmem_bytes_needed):
    # Explicit scoped-VMEM sizing, capped below physical VMEM with headroom
    # for compiler-internal scratch.
    cap = int(0.85 * _vmem_cap_bytes())
    limit = int(min(max(int(vmem_bytes_needed) + (4 << 20), 16 << 20), cap))
    return pltpu.CompilerParams(dimension_semantics=sems,
                                vmem_limit_bytes=limit)


# -----------------------------------------------------------------------------
# Kernel A: node scoring (tiled over nodes, lane-dense, single merged output)
#   score1 = tanh( x1 . (w1/||w1||) )
#   score2 = tanh( x2 . (w2/||w2||) )
#   score  = cw[0]*score1 + cw[1]*score2 + cb          (Conv1d(2, 1, 1))
# Output block is (8, TN): row0=score, row1=score1, row2=score2, rows 3-7 = 0.
# -----------------------------------------------------------------------------
def _score_kernel(x1_ref, x2_ref, w1_ref, w2_ref, cw_ref, cb_ref, out_ref):
    # x*_ref: (TN, C) node tile.  w*_ref: (8, C) row-broadcast weights already
    # scaled by 1/||w||_2 (norm hoisted to the wrapper).  The MXU computes
    # (8, C) @ (TN, C)^T -> (8, TN); row 0 is the score row, already lane-dense
    # (node axis on lanes -> one unmasked dense (8, TN) store per step).
    dn = (((1,), (1,)), ((), ()))  # contract the channel dims (lhs @ rhs.T)
    raw1 = jax.lax.dot_general(w1_ref[...], x1_ref[...], dn,
                               preferred_element_type=jnp.float32)
    raw2 = jax.lax.dot_general(w2_ref[...], x2_ref[...], dn,
                               preferred_element_type=jnp.float32)
    sc1 = jnp.tanh(raw1[0:1, :])                       # (1, TN)
    sc2 = jnp.tanh(raw2[0:1, :])                       # (1, TN)
    s = cw_ref[0] * sc1 + cw_ref[1] * sc2 + cb_ref[0]  # (1, TN)
    rows = jax.lax.broadcasted_iota(jnp.int32, out_ref.shape, 0)
    out_ref[...] = jnp.where(rows == 0, s,
                             jnp.where(rows == 1, sc1,
                                       jnp.where(rows == 2, sc2, 0.0)))


def compute_scores(x1, x2, w1, w2, conv_w, conv_b, target_tile_bytes=2 << 20):
    N, C = x1.shape

    # Hoist the weight norms out of the kernel (constant across tiles) and
    # broadcast to 8 rows so the MXU operand has a friendly sublane extent.
    w1s = jnp.broadcast_to(w1 * jax.lax.rsqrt(jnp.sum(w1 * w1)), (8, C))
    w2s = jnp.broadcast_to(w2 * jax.lax.rsqrt(jnp.sum(w2 * w2)), (8, C))

    # Node tile sized so each x tile carries ~target_tile_bytes of HBM traffic
    # (amortizes the ~0.35 us per-grid-step overhead); forced to a multiple of
    # 128 so output blocks stay lane-dense and legal.
    tn = max(128, _round_up(target_tile_bytes // (C * 4), 128))
    tn = min(tn, _round_up(max(N, 1), 128))
    n_pad = _round_up(N, tn)
    if n_pad != N:
        x1p = jnp.pad(x1, ((0, n_pad - N), (0, 0)))
        x2p = jnp.pad(x2, ((0, n_pad - N), (0, 0)))
    else:
        x1p, x2p = x1, x2

    smem = pl.BlockSpec(memory_space=pltpu.MemorySpace.SMEM)
    vmem_needed = (2 * 2 * tn * C * 4      # x1/x2 tiles, double-buffered
                   + 2 * 8 * tn * 4        # (8, tn) output, double-buffered
                   + 2 * 2 * 8 * C * 4)    # weights (constant-index blocks)

    # TODO(synk): optionally feed bf16 x1/x2 here on v6e/v7x to halve the HBM
    # read; kept f32 so near-tied top-k selections match the PyTorch reference.
    out = pl.pallas_call(
        _score_kernel,
        out_shape=jax.ShapeDtypeStruct((8, n_pad), jnp.float32),
        grid=(n_pad // tn,),
        in_specs=[
            pl.BlockSpec((tn, C), lambda i: (i, 0)),    # x1 tile
            pl.BlockSpec((tn, C), lambda i: (i, 0)),    # x2 tile
            pl.BlockSpec((8, C), lambda i: (0, 0)),     # w1 (resident)
            pl.BlockSpec((8, C), lambda i: (0, 0)),     # w2 (resident)
            smem,                                       # conv taps (2,)
            smem,                                       # conv bias (1,)
        ],
        out_specs=pl.BlockSpec((8, tn), lambda i: (0, i)),
        compiler_params=_compiler_params(("parallel",), vmem_needed),
    )(x1p, x2p, w1s, w2s, conv_w, conv_b)
    return out[0, :N], out[1, :N], out[2, :N]


# -----------------------------------------------------------------------------
# Kernel B: gather selected rows and scale them
#   x_out[i] = x[perm[i]] * (multiplier * tanh(score[perm[i]]))
# perm + precomputed scale live in SMEM; x1/x2 are kept resident in VMEM and
# R rows are gathered per grid step (amortizes per-step overhead).
# -----------------------------------------------------------------------------
def _gather_scale_kernel(perm_ref, scale_ref, x1_ref, x2_ref, o1_ref, o2_ref):
    rows = o1_ref.shape[0]
    base = pl.program_id(0) * rows

    # TODO(synk): a fully dense (R, C) gather (tpu dynamic-gather / DMA gather)
    # would avoid the per-row (1, C) stores; the row loop is kept because it
    # lowers unconditionally on all TPU generations.
    def body(r, carry):
        src = perm_ref[base + r]                 # node index (SMEM scalar)
        s = scale_ref[base + r]                  # multiplier*tanh(score) (SMEM)
        o1_ref[pl.ds(r, 1), :] = x1_ref[pl.ds(src, 1), :] * s
        o2_ref[pl.ds(r, 1), :] = x2_ref[pl.ds(src, 1), :] * s
        return carry

    jax.lax.fori_loop(0, rows, body, 0, unroll=8)


def gather_and_scale(x1, x2, scale, perm, rows_per_step=256):
    N, C = x1.shape
    K = perm.shape[0]

    R = min(rows_per_step, _round_up(K, 8))      # rows per grid step
    R = _round_up(R, 8)                          # keep sublane-aligned blocks
    k_pad = _round_up(K, R)

    # Resident-x footprint (the pipeline double-buffers every block, including
    # the constant-index x1/x2 blocks) plus the (R, C) output blocks.
    resident_bytes = 2 * 2 * N * C * 4 + 2 * 2 * R * C * 4
    budget = int(0.45 * _vmem_cap_bytes())
    if resident_bytes > budget or k_pad > 65536:
        # TODO(synk): manual HBM DMA gather (memory_space=pl.ANY +
        # make_async_copy per selected row, double-buffered) for graphs whose
        # node features do not fit VMEM; plain-JAX gather fallback for now.
        sc = scale[:, None]
        return x1[perm] * sc, x2[perm] * sc

    if k_pad != K:
        perm = jnp.pad(perm, (0, k_pad - K))     # padded rows gather node 0 ...
        scale = jnp.pad(scale, (0, k_pad - K))   # ... with scale 0 (sliced off)

    smem = pl.BlockSpec(memory_space=pltpu.MemorySpace.SMEM)

    o1, o2 = pl.pallas_call(
        _gather_scale_kernel,
        out_shape=(jax.ShapeDtypeStruct((k_pad, C), x1.dtype),
                   jax.ShapeDtypeStruct((k_pad, C), x2.dtype)),
        grid=(k_pad // R,),
        in_specs=[
            smem,                                     # perm  (k_pad,) int32
            smem,                                     # scale (k_pad,) float32
            pl.BlockSpec((N, C), lambda i: (0, 0)),   # x1 resident in VMEM
            pl.BlockSpec((N, C), lambda i: (0, 0)),   # x2 resident in VMEM
        ],
        out_specs=(pl.BlockSpec((R, C), lambda i: (i, 0)),
                   pl.BlockSpec((R, C), lambda i: (i, 0))),
        # "arbitrary": with VMEM-resident x, "parallel" would make each v7x
        # TensorCore hold (and re-DMA) its own full copy of x1/x2.
        compiler_params=_compiler_params(("arbitrary",), resident_bytes),
    )(perm, scale, x1, x2)
    return o1[:K], o2[:K]


# -----------------------------------------------------------------------------
# Plain-JAX glue (data-dependent selection / graph bookkeeping)
# -----------------------------------------------------------------------------
def topk_perm(score, ratio):
    # Single graph (batch == zeros): k = ceil(ratio * N), top scores, descending.
    n = score.shape[0]
    if isinstance(ratio, int) and ratio >= 1:
        k = min(ratio, n)
    else:
        k = int(math.ceil(ratio * n))
    k = max(k, 1)
    _, perm = jax.lax.top_k(score, k)
    return perm.astype(jnp.int32)


def filter_adj(edge_index, edge_attr, perm, num_nodes):
    # Relabel kept nodes to their position in perm; edges touching dropped nodes
    # are marked with -1 (static-shape padding).
    # TODO(synk): dynamic compaction of the filtered edge list has no
    # static-shape JAX/Pallas equivalent; dropped edges are -1-padded instead.
    k = perm.shape[0]
    node_map = jnp.full((num_nodes,), -1, dtype=jnp.int32)
    node_map = node_map.at[perm].set(jnp.arange(k, dtype=jnp.int32))
    row = node_map[edge_index[0]]
    col = node_map[edge_index[1]]
    keep = (row >= 0) & (col >= 0)
    new_ei = jnp.where(keep[None, :], jnp.stack([row, col]), -1)
    new_attr = None
    if edge_attr is not None:
        new_attr = jnp.where(keep[:, None], edge_attr, 0)
    return new_ei, new_attr


def mm_topk_pool(params, x1, x2, edge_index1, edge_index2,
                 edge_attr1=None, edge_attr2=None, batch=None,
                 ratio=0.5, multiplier=1.0):
    # TODO(synk): batched graphs / min_score path (softmax + per-graph top-k)
    # are not implemented; single-graph, min_score=None semantics only.
    n = x1.shape[0]
    if batch is None:
        batch = jnp.zeros((n,), dtype=jnp.int32)

    score, score1, score2 = compute_scores(
        x1, x2, params["weight1"], params["weight2"],
        params["conv_w"], params["conv_b"])

    perm = topk_perm(score, ratio)
    # Precompute the per-row scale once over K elements (folds the multiplier
    # and kills the per-row score DMA / tanh inside the gather kernel).
    scale = (jnp.tanh(score[perm]) * multiplier).astype(jnp.float32)
    x1_out, x2_out = gather_and_scale(x1, x2, scale, perm)

    batch_out = batch[perm]
    edge_index1, edge_attr1 = filter_adj(edge_index1, edge_attr1, perm, n)
    edge_index2, edge_attr2 = filter_adj(edge_index2, edge_attr2, perm, n)
    return (x1_out, x2_out, edge_index1, edge_index2, edge_attr1, edge_attr2,
            batch_out, perm, score, score1, score2)


# -----------------------------------------------------------------------------
# Deterministic parameter init (shapes follow MMTopKPool.__init__)
# -----------------------------------------------------------------------------
def init_params(key, in_channels):
    k1, k2, k3, k4 = jax.random.split(key, 4)
    # weight1 / weight2: (1, C), torch uniform_ -> U[0, 1)
    weight1 = jax.random.uniform(k1, (1, in_channels), jnp.float32)
    weight2 = jax.random.uniform(k2, (1, in_channels), jnp.float32)
    # group_score = Conv1d(2, 1, kernel_size=1): weight (1, 2, 1) -> (2,), bias (1,)
    bound = 1.0 / math.sqrt(2.0)
    conv_w = jax.random.uniform(k3, (2,), jnp.float32, -bound, bound)
    conv_b = jax.random.uniform(k4, (1,), jnp.float32, -bound, bound)
    return {"weight1": weight1, "weight2": weight2,
            "conv_w": conv_w, "conv_b": conv_b}


if __name__ == "__main__":
    key = jax.random.PRNGKey(0)
    kp, kx1, kx2, ke1, ke2 = jax.random.split(key, 5)

    N, C, E = 8, 32, 16
    params = init_params(kp, C)

    x1 = jax.random.normal(kx1, (N, C), jnp.float32)
    x2 = jax.random.normal(kx2, (N, C), jnp.float32)
    edge_index1 = jax.random.randint(ke1, (2, E), 0, N, dtype=jnp.int32)
    edge_index2 = jax.random.randint(ke2, (2, E), 0, N, dtype=jnp.int32)

    outs = mm_topk_pool(params, x1, x2, edge_index1, edge_index2,
                        ratio=0.5, multiplier=1.0)
    jax.block_until_ready(outs)

    # Light numerical sanity check against a plain-JAX reference.
    (x1_out, x2_out, ei1, ei2, ea1, ea2, batch_out, perm,
     score, score1, score2) = outs
    w1, w2 = params["weight1"], params["weight2"]
    cw, cb = params["conv_w"], params["conv_b"]
    s1_ref = jnp.tanh((x1 * w1).sum(-1) / jnp.linalg.norm(w1))
    s2_ref = jnp.tanh((x2 * w2).sum(-1) / jnp.linalg.norm(w2))
    s_ref = cw[0] * s1_ref + cw[1] * s2_ref + cb[0]
    assert float(jnp.max(jnp.abs(score - s_ref))) < 5e-2, "score mismatch"
    assert float(jnp.max(jnp.abs(score1 - s1_ref))) < 5e-2, "score1 mismatch"
    assert float(jnp.max(jnp.abs(score2 - s2_ref))) < 5e-2, "score2 mismatch"
    x1_exp = x1[perm] * jnp.tanh(score[perm])[:, None]
    x2_exp = x2[perm] * jnp.tanh(score[perm])[:, None]
    assert float(jnp.max(jnp.abs(x1_out - x1_exp))) < 1e-5, "gather mismatch"
    assert float(jnp.max(jnp.abs(x2_out - x2_exp))) < 1e-5, "gather mismatch"

    print("KERNEL_OK")
</pallas_src>

<mosaic_0001>
module attributes {stable_mosaic.version = 11 : i64} {
  func.func @_score_kernel(%arg0: i32, %arg1: memref<128x32xf32, #tpu.memory_space<vmem>>, %arg2: memref<128x32xf32, #tpu.memory_space<vmem>>, %arg3: memref<8x32xf32, #tpu.memory_space<vmem>>, %arg4: memref<8x32xf32, #tpu.memory_space<vmem>>, %arg5: memref<2xf32, #tpu.memory_space<smem>>, %arg6: memref<1xf32, #tpu.memory_space<smem>>, %arg7: memref<8x128xf32, #tpu.memory_space<vmem>>) attributes {dimension_semantics = [#tpu.dimension_semantics<parallel>], iteration_bounds = array<i64: 1>, scalar_prefetch = 0 : i64, scratch_operands = 0 : i64, tpu.core_type = #tpu.core_type<tc>, window_params = [{transform_indices = @transform_0, window_bounds = array<i64: 128, 32>}, {transform_indices = @transform_1, window_bounds = array<i64: 128, 32>}, {pipeline_mode = #tpu.pipeline_mode<synchronous>, transform_indices = @transform_2, window_bounds = array<i64: 8, 32>}, {pipeline_mode = #tpu.pipeline_mode<synchronous>, transform_indices = @transform_3, window_bounds = array<i64: 8, 32>}, {transform_indices = @transform_4, window_bounds = array<i64: 2>}, {transform_indices = @transform_5, window_bounds = array<i64: 1>}, {transform_indices = @transform_6, window_bounds = array<i64: 8, 128>}]} {
    %c0 = arith.constant 0 : index
    %c0_0 = arith.constant 0 : index
    %0 = vector.load %arg3[%c0, %c0_0] : memref<8x32xf32, #tpu.memory_space<vmem>>, vector<8x32xf32>
    %c0_1 = arith.constant 0 : index
    %c0_2 = arith.constant 0 : index
    %1 = vector.load %arg1[%c0_1, %c0_2] : memref<128x32xf32, #tpu.memory_space<vmem>>, vector<128x32xf32>
    %cst = arith.constant dense<0.000000e+00> : vector<8x128xf32>
    %2 = tpu.matmul %0, %1, %cst {dimension_numbers = #tpu.dot_dimension_numbers<[1], [1], [0], [0], [0, 0, 1, 0], [], []>} : vector<8x32xf32>, vector<128x32xf32>, vector<8x128xf32> -> vector<8x128xf32>
    %c0_3 = arith.constant 0 : index
    %c0_4 = arith.constant 0 : index
    %3 = vector.load %arg4[%c0_3, %c0_4] : memref<8x32xf32, #tpu.memory_space<vmem>>, vector<8x32xf32>
    %c0_5 = arith.constant 0 : index
    %c0_6 = arith.constant 0 : index
    %4 = vector.load %arg2[%c0_5, %c0_6] : memref<128x32xf32, #tpu.memory_space<vmem>>, vector<128x32xf32>
    %cst_7 = arith.constant dense<0.000000e+00> : vector<8x128xf32>
    %5 = tpu.matmul %3, %4, %cst_7 {dimension_numbers = #tpu.dot_dimension_numbers<[1], [1], [0], [0], [0, 0, 1, 0], [], []>} : vector<8x32xf32>, vector<128x32xf32>, vector<8x128xf32> -> vector<8x128xf32>
    %6 = vector.extract_strided_slice %2 {offsets = [0, 0], sizes = [1, 128], strides = [1, 1]} : vector<8x128xf32> to vector<1x128xf32>
    %7 = math.tanh %6 : vector<1x128xf32>
    %8 = vector.extract_strided_slice %5 {offsets = [0, 0], sizes = [1, 128], strides = [1, 1]} : vector<8x128xf32> to vector<1x128xf32>
    %9 = math.tanh %8 : vector<1x128xf32>
    %c0_8 = arith.constant 0 : index
    %10 = memref.load %arg5[%c0_8] : memref<2xf32, #tpu.memory_space<smem>>
    %11 = vector.broadcast %10 : f32 to vector<1x128xf32>
    %12 = arith.mulf %11, %7 : vector<1x128xf32>
    %c1 = arith.constant 1 : index
    %13 = memref.load %arg5[%c1] : memref<2xf32, #tpu.memory_space<smem>>
    %14 = vector.broadcast %13 : f32 to vector<1x128xf32>
    %15 = arith.mulf %14, %9 : vector<1x128xf32>
    %16 = arith.addf %12, %15 : vector<1x128xf32>
    %c0_9 = arith.constant 0 : index
    %17 = memref.load %arg6[%c0_9] : memref<1xf32, #tpu.memory_space<smem>>
    %18 = vector.broadcast %17 : f32 to vector<1x128xf32>
    %19 = arith.addf %16, %18 : vector<1x128xf32>
    %20 = tpu.iota {dimensions = array<i32: 0>} : vector<8x128xi32>
    %c0_i32 = arith.constant 0 : i32
    %21 = vector.broadcast %c0_i32 : i32 to vector<8x128xi32>
    %22 = arith.cmpi eq, %20, %21 : vector<8x128xi32>
    %c1_i32 = arith.constant 1 : i32
    %23 = vector.broadcast %c1_i32 : i32 to vector<8x128xi32>
    %24 = arith.cmpi eq, %20, %23 : vector<8x128xi32>
    %c2_i32 = arith.constant 2 : i32
    %25 = vector.broadcast %c2_i32 : i32 to vector<8x128xi32>
    %26 = arith.cmpi eq, %20, %25 : vector<8x128xi32>
    %cst_10 = arith.constant 0.000000e+00 : f32
    %27 = vector.shape_cast %9 : vector<1x128xf32> to vector<1x128xf32>
    %28 = vector.broadcast %27 : vector<1x128xf32> to vector<8x128xf32>
    %29 = vector.broadcast %cst_10 : f32 to vector<8x128xf32>
    %30 = arith.select %26, %28, %29 : vector<8x128xi1>, vector<8x128xf32>
    %31 = vector.shape_cast %7 : vector<1x128xf32> to vector<1x128xf32>
    %32 = vector.broadcast %31 : vector<1x128xf32> to vector<8x128xf32>
    %33 = arith.select %24, %32, %30 : vector<8x128xi1>, vector<8x128xf32>
    %34 = vector.shape_cast %19 : vector<1x128xf32> to vector<1x128xf32>
    %35 = vector.broadcast %34 : vector<1x128xf32> to vector<8x128xf32>
    %36 = arith.select %22, %35, %33 : vector<8x128xi1>, vector<8x128xf32>
    %c0_11 = arith.constant 0 : index
    %c0_12 = arith.constant 0 : index
    %37 = vector.load %arg7[%c0_11, %c0_12] : memref<8x128xf32, #tpu.memory_space<vmem>>, vector<8x128xf32>
    tpu.vector_store %arg7[%c0_11, %c0_12], %36 {strides = array<i32>} : memref<8x128xf32, #tpu.memory_space<vmem>>, vector<8x128xf32>,
    return
  }
  func.func @transform_0(%arg0: i32) -> (i32, i32) {
    %c0_i32 = arith.constant 0 : i32
    %c0_i32_0 = arith.constant 0 : i32
    return %arg0, %c0_i32 : i32, i32
  }
  func.func @transform_1(%arg0: i32) -> (i32, i32) {
    %c0_i32 = arith.constant 0 : i32
    %c0_i32_0 = arith.constant 0 : i32
    return %arg0, %c0_i32 : i32, i32
  }
  func.func @transform_2(%arg0: i32) -> (i32, i32) {
    %c0_i32 = arith.constant 0 : i32
    %c0_i32_0 = arith.constant 0 : i32
    %c0_i32_1 = arith.constant 0 : i32
    return %c0_i32, %c0_i32_0 : i32, i32
  }
  func.func @transform_3(%arg0: i32) -> (i32, i32) {
    %c0_i32 = arith.constant 0 : i32
    %c0_i32_0 = arith.constant 0 : i32
    %c0_i32_1 = arith.constant 0 : i32
    return %c0_i32, %c0_i32_0 : i32, i32
  }
  func.func @transform_4(%arg0: i32) -> i32 {
    %c0_i32 = arith.constant 0 : i32
    %c0_i32_0 = arith.constant 0 : i32
    return %c0_i32 : i32
  }
  func.func @transform_5(%arg0: i32) -> i32 {
    %c0_i32 = arith.constant 0 : i32
    %c0_i32_0 = arith.constant 0 : i32
    return %c0_i32 : i32
  }
  func.func @transform_6(%arg0: i32) -> (i32, i32) {
    %c0_i32 = arith.constant 0 : i32
    %c0_i32_0 = arith.constant 0 : i32
    return %c0_i32, %arg0 : i32, i32
  }
}

</mosaic_0001>

<bundles_post_ra>
// kernel: tpu_custom_call.1
= control target key start
LH: loop header
LB: loop body
LE: loop exit
PB: predicated region body
PF: predicated region fallthrough
CT: control target
= control target key end

     0   :  { %12 = vsyncpa [#allocation5], 0  ;;  %s519_s0 = inlined_call_operand.vmem [shape: f32[128,32], index: 0, kind: input, shape index: {}]   ;;  %s520_s1 = inlined_call_operand.vmem [shape: f32[128,32], index: 1, kind: input, shape index: {}]   ;;  %s521_s2 = inlined_call_operand.vmem [shape: f32[8,32], index: 2, kind: input, shape index: {}]   ;;  %s522_s3 = inlined_call_operand.vmem [shape: f32[8,32], index: 3, kind: input, shape index: {}]   ;;  %s523_s4 = inlined_call_operand.vmem [shape: f32[2], index: 4, kind: input, shape index: {}]   ;;  %s524_s5 = inlined_call_operand.<no memory space> [shape: f32[1], index: 5, kind: input, shape index: {}]   ;;  %s525_s6 = inlined_call_operand.hbm [shape: f32[8,128], index: 6, kind: output, shape index: {}]  }
   0x1   :  { %13 = vsyncpa [#allocation4], 0  ;;  %s27_s23 = sshll.u32 %s523_s4, 4  ;;  %s337_s24 = smov [#allocation3]   ;;  %s28_s23 = int_to_ptr.vmem [resolvable:$true] %s27_s23 }
   0x2   :  { %30 = dma.vmem_to_smem %s28_s23, 16, %s337_s24, [#allocation5]  }
   0x3   :  { %333 = dma.done.wait [#allocation5], 16  }
   0x4   :  { %334 = vsyncadd [#allocation5], 4294967280 }
   0x5   :  { %37 = sfence }
   0x6   :  { %v54_v0 = vld [vmem:[%s519_s0 + $0x78] sm:$0xff]  ;;  %vm55_vm0 = vcmask 261120   ;;  %v53_v2 = vld [vmem:[%s519_s0 + $0x70] sm:$0xff]  ;;  %v52_v4 = vld [vmem:[%s519_s0 + $0x68] sm:$0xff]  ;;  %s290_s18 = sld [smem:[#allocation3 + $0x1]]  ;;  %v227_v36 = vlaneseq  ;;  %v225_v45 = vstv %s524_s5  ;;  %s246_s22 = sshll.u32 %s525_s6, 4  ;;  %s247_s22 = int_to_ptr.hbm [resolvable:$true] %s246_s22 }
   0x7   :  { %v143_v1 = vld [vmem:[%s520_s1 + $0x78] sm:$0xff]  ;;  %256 = vmatpush.xpose.msk.msra.mxu0 %vm55_vm0, %v54_v0  ;;  %v142_v3 = vld [vmem:[%s520_s1 + $0x70] sm:$0xff]  ;;  %v141_v5 = vld [vmem:[%s520_s1 + $0x68] sm:$0xff] }
   0x8   :  { %273 = vmatpush.xpose.msk.msra.mxu1 %vm55_vm0, %v143_v1  ;;  %v51_v6 = vld [vmem:[%s519_s0 + $0x60] sm:$0xff]  ;;  %v50_v8 = vld [vmem:[%s519_s0 + $0x58] sm:$0xff]  ;;  %v49_v10 = vld [vmem:[%s519_s0 + $0x50] sm:$0xff]  ;;  %v228_v39 = vshrl.u32 %v227_v36, 7 }
   0x9   :  { %v140_v7 = vld [vmem:[%s520_s1 + $0x60] sm:$0xff]  ;;  %v139_v9 = vld [vmem:[%s520_s1 + $0x58] sm:$0xff]  ;;  %v138_v11 = vld [vmem:[%s520_s1 + $0x50] sm:$0xff] }
   0xa   :  { %v48_v12 = vld [vmem:[%s519_s0 + $0x48] sm:$0xff]  ;;  %v47_v14 = vld [vmem:[%s519_s0 + $0x40] sm:$0xff]  ;;  %v46_v16 = vld [vmem:[%s519_s0 + $0x38] sm:$0xff]  ;;  %vm231_vm1 = vcmp.eq.s32.totalorder %v228_v39, 2  ;;  %vm230_vm2 = vcmp.eq.s32.totalorder %v228_v39, 1  ;;  %vm229_vm3 = vcmp.eq.s32.totalorder %v228_v39, 0 }
   0xb   :  { %257 = vmatpush.xpose.msk.msra.mxu0 %vm55_vm0, %v53_v2  ;;  %v137_v13 = vld [vmem:[%s520_s1 + $0x48] sm:$0xff]  ;;  %v136_v15 = vld [vmem:[%s520_s1 + $0x40] sm:$0xff]  ;;  %v135_v17 = vld [vmem:[%s520_s1 + $0x38] sm:$0xff] }
   0xc   :  { %274 = vmatpush.xpose.msk.msra.mxu1 %vm55_vm0, %v142_v3  ;;  %v45_v18 = vld [vmem:[%s519_s0 + $0x30] sm:$0xff]  ;;  %v44_v20 = vld [vmem:[%s519_s0 + $0x28] sm:$0xff]  ;;  %v43_v22 = vld [vmem:[%s519_s0 + $0x20] sm:$0xff]  ;;  %v221_v38 = vstv %s290_s18 }
   0xd   :  { %v134_v19 = vld [vmem:[%s520_s1 + $0x30] sm:$0xff]  ;;  %v133_v21 = vld [vmem:[%s520_s1 + $0x28] sm:$0xff]  ;;  %v132_v23 = vld [vmem:[%s520_s1 + $0x20] sm:$0xff] }
   0xe   :  { %v42_v24 = vld [vmem:[%s519_s0 + $0x18] sm:$0xff]  ;;  %v41_v26 = vld [vmem:[%s519_s0 + $0x10] sm:$0xff]  ;;  %v40_v28 = vld [vmem:[%s519_s0 + $0x8] sm:$0xff] }
   0xf   :  { %258 = vmatpush.xpose.msk.msra.mxu0 %vm55_vm0, %v52_v4  ;;  %v131_v25 = vld [vmem:[%s520_s1 + $0x18] sm:$0xff]  ;;  %v130_v27 = vld [vmem:[%s520_s1 + $0x10] sm:$0xff]  ;;  %v129_v29 = vld [vmem:[%s520_s1 + $0x8] sm:$0xff] }
  0x10   :  { %275 = vmatpush.xpose.msk.msra.mxu1 %vm55_vm0, %v141_v5  ;;  %v39_v30 = vld [vmem:[%s519_s0] sm:$0xff]  ;;  %s217_s0 = sld [smem:[#allocation3]] }
  0x11   :  { %v128_v31 = vld [vmem:[%s520_s1] sm:$0xff] }
  0x12   :  { %v38_v32 = vld [vmem:[%s521_s2] sm:$0xff] }
  0x13   :  { %259 = vmatpush.xpose.msk.msra.mxu0 %vm55_vm0, %v51_v6  ;;  %v127_v33 = vld [vmem:[%s522_s3] sm:$0xff]  ;;  %s338_s3 = smov [#allocation6]  }
  0x14   :  { %276 = vmatpush.xpose.msk.msra.mxu1 %vm55_vm0, %v140_v7  ;;  %s244_s19 = sshll.u32 %s338_s3, 4  ;;  %s245_s19 = int_to_ptr.vmem [resolvable:$true] %s244_s19 }
  0x16   :  { %v218_v37 = vstv %s217_s0 }
  0x17   :  { %260 = vmatpush.xpose.msk.msra.mxu0 %vm55_vm0, %v50_v8 }
  0x18   :  { %277 = vmatpush.xpose.msk.msra.mxu1 %vm55_vm0, %v139_v9 }
  0x1b   :  { %261 = vmatpush.xpose.msk.msra.mxu0 %vm55_vm0, %v49_v10 }
  0x1c   :  { %278 = vmatpush.xpose.msk.msra.mxu1 %vm55_vm0, %v138_v11 }
  0x1f   :  { %262 = vmatpush.xpose.msk.msra.mxu0 %vm55_vm0, %v48_v12 }
  0x20   :  { %279 = vmatpush.xpose.msk.msra.mxu1 %vm55_vm0, %v137_v13 }
  0x23   :  { %263 = vmatpush.xpose.msk.msra.mxu0 %vm55_vm0, %v47_v14 }
  0x24   :  { %280 = vmatpush.xpose.msk.msra.mxu1 %vm55_vm0, %v136_v15 }
  0x27   :  { %264 = vmatpush.xpose.msk.msra.mxu0 %vm55_vm0, %v46_v16 }
  0x28   :  { %281 = vmatpush.xpose.msk.msra.mxu1 %vm55_vm0, %v135_v17 }
  0x2b   :  { %265 = vmatpush.xpose.msk.msra.mxu0 %vm55_vm0, %v45_v18 }
  0x2c   :  { %282 = vmatpush.xpose.msk.msra.mxu1 %vm55_vm0, %v134_v19 }
  0x2f   :  { %266 = vmatpush.xpose.msk.msra.mxu0 %vm55_vm0, %v44_v20 }
  0x30   :  { %283 = vmatpush.xpose.msk.msra.mxu1 %vm55_vm0, %v133_v21 }
  0x33   :  { %267 = vmatpush.xpose.msk.msra.mxu0 %vm55_vm0, %v43_v22 }
  0x34   :  { %284 = vmatpush.xpose.msk.msra.mxu1 %vm55_vm0, %v132_v23 }
  0x37   :  { %268 = vmatpush.xpose.msk.msra.mxu0 %vm55_vm0, %v42_v24 }
  0x38   :  { %285 = vmatpush.xpose.msk.msra.mxu1 %vm55_vm0, %v131_v25 }
  0x3b   :  { %269 = vmatpush.xpose.msk.msra.mxu0 %vm55_vm0, %v41_v26 }
  0x3c   :  { %286 = vmatpush.xpose.msk.msra.mxu1 %vm55_vm0, %v130_v27 }
  0x3f   :  { %270 = vmatpush.xpose.msk.msra.mxu0 %vm55_vm0, %v40_v28 }
  0x40   :  { %287 = vmatpush.xpose.msk.msra.mxu1 %vm55_vm0, %v129_v29 }
  0x43   :  { %271 = vmatpush.xpose.msk.msra.mxu0 %vm55_vm0, %v39_v30 }
  0x44   :  { %288 = vmatpush.xpose.msk.msra.mxu1 %vm55_vm0, %v128_v31 }
  0x46   :  { %272 = vmatmul.msk.f32.vlgmr.msra.gmra.mxu0 %vm55_vm0, %v38_v32 }
  0x47   :  { %289 = vmatmul.msk.f32.vlgmr.msra.gmra.mxu1 %vm55_vm0, %v127_v33 }
  0xc3   :  { %v124_v34 = vpop.f32.mrf.mxu0 }
  0xc4   :  { %v212_v35 = vpop.f32.mrf.mxu1  ;;  %293 = vtanh.f32 %v124_v34 }
  0xc5   :  { %295 = vtanh.f32 %v212_v35 }
  0xca   :  { %v294_v40 = vpop.eup %293 }
  0xcb   :  { %v296_v41 = vpop.eup %295  ;;  %v219_v42 = vmul.f32 %v294_v40, %v218_v37  ;;  %v234_v47 = vperm.slane %v294_v40, 0 }
  0xcc   :  { %v222_v43 = vmul.f32 %v296_v41, %v221_v38  ;;  %v232_v44 = vperm.slane %v296_v41, 0 }
  0xce   :  { %v223_v46 = vadd.f32 %v222_v43, %v219_v42  ;;  %v233_v49 = vsel %vm231_vm1, %v232_v44, 0.0 }
  0xcf   :  { %v235_v51 = vsel %vm230_vm2, %v234_v47, %v233_v49 }
  0xd0   :  { %v226_v48 = vadd.f32 %v225_v45, %v223_v46 }
  0xd2   :  { %v236_v50 = vperm.slane %v226_v48, 0 }
  0xd4   :  { %v237_v52 = vsel %vm229_vm3, %v236_v50, %v235_v51 }
  0xd5   :  { %238 = vst [vmem:[#allocation6] sm:$0xff] %v237_v52 }
  0xd6   :  { %249 = dma.vmem_to_hbm [thread:$0]  %s245_s19, 128, %s247_s22, [#allocation4]  }
  0xd7   :  { %335 = dma.done.wait [#allocation4], 128  }
  0xd8   :  { %336 = vsyncadd [#allocation4], 4294967168 }
  0xd9   :  { %254 = vsyncpa [#allocation4], 1 }
  0xda   :  { %255 = vsyncpa [#allocation5], 1 }

</bundles_post_ra>
